<compile_context>
chip_gen: v7x
topology: tpu7x:2x2x1
jax: 0.10.0
libtpu: 0.0.40
codegen_flags: <defaults>
</compile_context>

<pallas_src>
import functools

import jax
import jax.numpy as jnp
from jax.experimental import pallas as pl
from jax.experimental.pallas import tpu as pltpu


def _round_up(v, m):
    return (v + m - 1) // m * m


def channel_attention_kernel(x_ref, w1t_ref, w2t_ref, o_ref, pool_sc, *, hw, tile_hw):
    # x_ref:   (Bt, C, tile_hw)    spatial tile of the input (native dtype)
    # w1t_ref: (C, hidden)         fc1 weight, pre-transposed
    # w2t_ref: (hidden, C)         fc2 weight, pre-transposed
    # o_ref:   (Bt, C)             channel attention weights
    # pool_sc: (2*Bt, C, 128) f32  lane-wide accumulators:
    #                              rows [0:Bt) running sum, rows [Bt:) running max
    s = pl.program_id(1)
    n_s = pl.num_programs(1)
    bt = o_ref.shape[0]
    c = o_ref.shape[1]
    n_chunks = tile_hw // 128
    has_tail = (hw % tile_hw) != 0  # static python bool

    @pl.when(s == 0)
    def _init():
        pool_sc[0:bt] = jnp.zeros((bt, c, 128), jnp.float32)
        pool_sc[bt:] = jnp.full((bt, c, 128), -jnp.inf, jnp.float32)

    def accum_chunk(off, masked):
        chunk = x_ref[:, :, pl.ds(off, 128)].astype(jnp.float32)
        if masked:
            lane = jax.lax.broadcasted_iota(jnp.int32, chunk.shape, dimension=2)
            valid = (s * tile_hw + off + lane) < hw
            sum_v = jnp.where(valid, chunk, 0.0)
            max_v = jnp.where(valid, chunk, -jnp.inf)
        else:
            sum_v = chunk
            max_v = chunk
        pool_sc[0:bt] = pool_sc[0:bt] + sum_v
        pool_sc[bt:] = jnp.maximum(pool_sc[bt:], max_v)

    def accum_tile(masked):
        if n_chunks <= 8:
            # Small tiles: fully static chunk loop (no loop overhead).
            for i in range(n_chunks):
                accum_chunk(i * 128, masked)
        else:
            unroll = next(u for u in (8, 4, 2, 1) if n_chunks % u == 0)

            def body(i, carry):
                accum_chunk(pl.multiple_of(i * 128, 128), masked)
                return carry

            jax.lax.fori_loop(0, n_chunks, body, 0, unroll=unroll)

    if has_tail:
        # Unmasked fast path for all but the last spatial tile; masking cost is
        # only paid on the single partial tile.
        @pl.when(s < n_s - 1)
        def _fast():
            accum_tile(masked=False)

        @pl.when(s == n_s - 1)
        def _tail():
            accum_tile(masked=True)
    else:
        accum_tile(masked=False)

    @pl.when(s == n_s - 1)
    def _finalize():
        p = pool_sc[...]                                     # (2*Bt, C, 128) f32
        sums = jnp.sum(p, axis=-1)                           # (2*Bt, C)
        maxs = jnp.max(p, axis=-1)                           # (2*Bt, C)
        row = jax.lax.broadcasted_iota(jnp.int32, sums.shape, dimension=0)
        # Rows [0:Bt) -> average pool (scale by 1/HW); rows [Bt:) -> max pool.
        pooled = jnp.where(row < bt, sums * jnp.float32(1.0 / hw), maxs)
        # Shared MLP run once on the stacked (avg | max) rows.
        w1t = w1t_ref[...].astype(jnp.float32)
        w2t = w2t_ref[...].astype(jnp.float32)
        h = jnp.maximum(jnp.dot(pooled, w1t, preferred_element_type=jnp.float32), 0.0)
        y = jnp.dot(h, w2t, preferred_element_type=jnp.float32)
        out = jax.nn.sigmoid(y[0:bt, :] + y[bt:, :])
        o_ref[...] = out.astype(o_ref.dtype)


def channel_attention(x, w1, w2, *, tile_hw=None, batch_block=None):
    """x: (B, C, H, W) NCHW; w1: (hidden, C) fc1 weight; w2: (C, hidden) fc2 weight.

    Returns sigmoid(fc2(relu(fc1(avg_pool(x)))) + fc2(relu(fc1(max_pool(x)))))
    with shape (B, C, 1, 1), matching the PyTorch module.
    """
    B, C, H, W = x.shape
    hidden, c_in = w1.shape
    assert c_in == C and w2.shape == (C, hidden)
    HW = H * W

    x_flat = x.reshape(B, C, HW)
    w1t = jnp.transpose(w1)  # (C, hidden)
    w2t = jnp.transpose(w2)  # (hidden, C)

    if batch_block is None:
        # Split the "parallel" batch axis (v7x megacore) only when the resulting
        # (Bt, C) output block keeps an 8-aligned sublane dim; otherwise one block.
        if B % 2 == 0 and (B // 2) % 8 == 0:
            batch_block = B // 2
        else:
            batch_block = B
    assert B % batch_block == 0
    n_b = B // batch_block

    itemsize = jnp.dtype(x.dtype).itemsize

    # Generation-aware VMEM cap (v7x has only 64 MiB per TensorCore).
    try:
        phys_vmem = int(pltpu.get_tpu_info().vmem_capacity_bytes)
    except Exception:
        phys_vmem = 64 << 20
    vmem_cap = (phys_vmem * 3) // 4

    if tile_hw is None:
        # ~8 MiB per x block (16 MiB double-buffered) amortizes per-step overhead
        # while staying well under the cap; keep >=512 lanes for efficient DMA rows.
        target = min(8 << 20, max(1 << 20, (vmem_cap - (4 << 20)) // 2))
        tile_hw = (target // (batch_block * C * itemsize)) // 128 * 128
        tile_hw = max(512, tile_hw)
    tile_hw = int(min(tile_hw, _round_up(HW, 128)))
    tile_hw = max(128, (tile_hw // 128) * 128)
    n_s = pl.cdiv(HW, tile_hw)

    x_block_bytes = batch_block * C * tile_hw * itemsize
    w_bytes = (w1t.size * w1t.dtype.itemsize + w2t.size * w2t.dtype.itemsize)
    pool_bytes = 2 * batch_block * C * 128 * 4
    need = 2 * x_block_bytes + 2 * w_bytes + pool_bytes + (2 << 20)
    vmem_limit = int(min(vmem_cap, max(8 << 20, need)))

    kernel = functools.partial(channel_attention_kernel, hw=HW, tile_hw=tile_hw)

    out = pl.pallas_call(
        kernel,
        out_shape=jax.ShapeDtypeStruct((B, C), x.dtype),
        grid_spec=pltpu.PrefetchScalarGridSpec(
            num_scalar_prefetch=0,
            grid=(n_b, n_s),
            in_specs=[
                pl.BlockSpec((batch_block, C, tile_hw), lambda b, s: (b, 0, s)),
                pl.BlockSpec((C, hidden), lambda b, s: (0, 0)),
                pl.BlockSpec((hidden, C), lambda b, s: (0, 0)),
            ],
            out_specs=pl.BlockSpec((batch_block, C), lambda b, s: (b, 0)),
            scratch_shapes=[pltpu.VMEM((2 * batch_block, C, 128), jnp.float32)],
        ),
        compiler_params=pltpu.CompilerParams(
            dimension_semantics=("parallel", "arbitrary"),
            vmem_limit_bytes=vmem_limit,
        ),
    )(x_flat, w1t, w2t)

    return out.reshape(B, C, 1, 1)


def reference(x, w1, w2):
    # Pure-JAX reference mirroring the PyTorch forward.
    avg_p = jnp.mean(x, axis=(2, 3))  # (B, C)
    max_p = jnp.max(x, axis=(2, 3))   # (B, C)

    def mlp(p):
        h = jnp.maximum(p @ w1.T, 0.0)
        return h @ w2.T

    out = jax.nn.sigmoid(mlp(avg_p) + mlp(max_p))
    return out[:, :, None, None]


if __name__ == "__main__":
    key = jax.random.PRNGKey(0)
    k_x, k_w1, k_w2, k_x2 = jax.random.split(key, 4)

    # Channels must be >= 16 so that in_planes // 16 >= 1 (as in the module).
    B, C, H, W = 2, 32, 18, 18        # H*W = 324: exercises the masked tail tile
    hidden = C // 16                  # fc1 hardcodes //16 regardless of `ratio`

    x = jax.random.normal(k_x, (B, C, H, W), dtype=jnp.float32)
    # Deterministic synthetic weights (Conv2d 1x1, no bias -> dense matrices).
    w1 = jax.random.normal(k_w1, (hidden, C), dtype=jnp.float32) * (1.0 / C ** 0.5)
    w2 = jax.random.normal(k_w2, (C, hidden), dtype=jnp.float32) * (1.0 / hidden ** 0.5)

    ref = reference(x, w1, w2)

    # Forced small spatial tile -> 3 grid steps: init/accumulate/finalize plus the
    # masked tail path on the last partial tile.
    out_tiled = jax.block_until_ready(channel_attention(x, w1, w2, tile_hw=128))
    assert out_tiled.shape == (B, C, 1, 1), out_tiled.shape
    assert jnp.allclose(out_tiled, ref, atol=1e-5, rtol=1e-5), "mismatch vs reference (tiled)"

    # Default auto-sized tile (single spatial step, masked because HW % tile != 0).
    out_auto = jax.block_until_ready(channel_attention(x, w1, w2))
    assert jnp.allclose(out_auto, ref, atol=1e-5, rtol=1e-5), "mismatch vs reference (auto)"

    # Larger spatial input: exercises the unmasked fast path (HW % tile == 0) and
    # the unrolled fori_loop chunk path (tile_hw=2048 -> 16 lane chunks per step).
    H2 = W2 = 64
    x2 = jax.random.normal(k_x2, (B, C, H2, W2), dtype=jnp.float32)
    ref2 = reference(x2, w1, w2)
    out_big = jax.block_until_ready(
        channel_attention(x2, w1, w2, tile_hw=2048, batch_block=B))
    assert jnp.allclose(out_big, ref2, atol=1e-5, rtol=1e-5), "mismatch vs reference (big)"

    print("KERNEL_OK")
</pallas_src>

<mosaic_0001>
module attributes {stable_mosaic.version = 11 : i64} {
  func.func @channel_attention_kernel(%arg0: i32, %arg1: i32, %arg2: memref<2x32x128xf32, #tpu.memory_space<vmem>>, %arg3: memref<32x2xf32, #tpu.memory_space<vmem>>, %arg4: memref<2x32xf32, #tpu.memory_space<vmem>>, %arg5: memref<2x32xf32, #tpu.memory_space<vmem>>, %arg6: memref<4x32x128xf32, #tpu.memory_space<vmem>>) attributes {dimension_semantics = [#tpu.dimension_semantics<parallel>, #tpu.dimension_semantics<arbitrary>], iteration_bounds = array<i64: 1, 3>, scalar_prefetch = 0 : i64, scratch_operands = 1 : i64, tpu.core_type = #tpu.core_type<tc>, window_params = [{transform_indices = @transform_0, window_bounds = array<i64: 2, 32, 128>}, {pipeline_mode = #tpu.pipeline_mode<synchronous>, transform_indices = @transform_1, window_bounds = array<i64: 32, 2>}, {pipeline_mode = #tpu.pipeline_mode<synchronous>, transform_indices = @transform_2, window_bounds = array<i64: 2, 32>}, {transform_indices = @transform_3, window_bounds = array<i64: 2, 32>}]} {
    %c0_i32 = arith.constant 0 : i32
    %0 = arith.cmpi eq, %arg1, %c0_i32 : i32
    %1 = arith.extui %0 : i1 to i32
    %c0_i32_0 = arith.constant 0 : i32
    %2 = arith.cmpi ne, %1, %c0_i32_0 : i32
    scf.if %2 {
      %cst = arith.constant 0.000000e+00 : f32
      %12 = vector.broadcast %cst : f32 to vector<2x32x128xf32>
      %c0 = arith.constant 0 : index
      %c0_6 = arith.constant 0 : index
      %c0_7 = arith.constant 0 : index
      %13 = vector.load %arg6[%c0, %c0_6, %c0_7] : memref<4x32x128xf32, #tpu.memory_space<vmem>>, vector<2x32x128xf32>
      tpu.vector_store %arg6[%c0, %c0_6, %c0_7], %12 {strides = array<i32>} : memref<4x32x128xf32, #tpu.memory_space<vmem>>, vector<2x32x128xf32>,
      %cst_8 = arith.constant 0xFF800000 : f32
      %14 = vector.broadcast %cst_8 : f32 to vector<2x32x128xf32>
      %c2 = arith.constant 2 : index
      %c0_9 = arith.constant 0 : index
      %c0_10 = arith.constant 0 : index
      %15 = vector.load %arg6[%c2, %c0_9, %c0_10] : memref<4x32x128xf32, #tpu.memory_space<vmem>>, vector<2x32x128xf32>
      tpu.vector_store %arg6[%c2, %c0_9, %c0_10], %14 {strides = array<i32>} : memref<4x32x128xf32, #tpu.memory_space<vmem>>, vector<2x32x128xf32>,
    } else {
    }
    %c2_i32 = arith.constant 2 : i32
    %3 = arith.cmpi slt, %arg1, %c2_i32 : i32
    %4 = arith.extui %3 : i1 to i32
    %c0_i32_1 = arith.constant 0 : i32
    %5 = arith.cmpi ne, %4, %c0_i32_1 : i32
    scf.if %5 {
      %c0 = arith.constant 0 : index
      %c0_6 = arith.constant 0 : index
      %c0_7 = arith.constant 0 : index
      %12 = vector.load %arg2[%c0, %c0_6, %c0_7] : memref<2x32x128xf32, #tpu.memory_space<vmem>>, vector<2x32x128xf32>
      %c0_8 = arith.constant 0 : index
      %c0_9 = arith.constant 0 : index
      %c0_10 = arith.constant 0 : index
      %13 = vector.load %arg6[%c0_8, %c0_9, %c0_10] : memref<4x32x128xf32, #tpu.memory_space<vmem>>, vector<2x32x128xf32>
      %14 = arith.addf %13, %12 : vector<2x32x128xf32>
      %c0_11 = arith.constant 0 : index
      %c0_12 = arith.constant 0 : index
      %c0_13 = arith.constant 0 : index
      %15 = vector.load %arg6[%c0_11, %c0_12, %c0_13] : memref<4x32x128xf32, #tpu.memory_space<vmem>>, vector<2x32x128xf32>
      tpu.vector_store %arg6[%c0_11, %c0_12, %c0_13], %14 {strides = array<i32>} : memref<4x32x128xf32, #tpu.memory_space<vmem>>, vector<2x32x128xf32>,
      %c2 = arith.constant 2 : index
      %c0_14 = arith.constant 0 : index
      %c0_15 = arith.constant 0 : index
      %16 = vector.load %arg6[%c2, %c0_14, %c0_15] : memref<4x32x128xf32, #tpu.memory_space<vmem>>, vector<2x32x128xf32>
      %17 = arith.maximumf %16, %12 : vector<2x32x128xf32>
      %c2_16 = arith.constant 2 : index
      %c0_17 = arith.constant 0 : index
      %c0_18 = arith.constant 0 : index
      %18 = vector.load %arg6[%c2_16, %c0_17, %c0_18] : memref<4x32x128xf32, #tpu.memory_space<vmem>>, vector<2x32x128xf32>
      tpu.vector_store %arg6[%c2_16, %c0_17, %c0_18], %17 {strides = array<i32>} : memref<4x32x128xf32, #tpu.memory_space<vmem>>, vector<2x32x128xf32>,
    } else {
    }
    %c2_i32_2 = arith.constant 2 : i32
    %6 = arith.cmpi eq, %arg1, %c2_i32_2 : i32
    %7 = arith.extui %6 : i1 to i32
    %c0_i32_3 = arith.constant 0 : i32
    %8 = arith.cmpi ne, %7, %c0_i32_3 : i32
    scf.if %8 {
      %c0 = arith.constant 0 : index
      %c0_6 = arith.constant 0 : index
      %c0_7 = arith.constant 0 : index
      %12 = vector.load %arg2[%c0, %c0_6, %c0_7] : memref<2x32x128xf32, #tpu.memory_space<vmem>>, vector<2x32x128xf32>
      %13 = tpu.iota {dimensions = array<i32: 2>} : vector<2x32x128xi32>
      %c128_i32 = arith.constant 128 : i32
      %14 = arith.muli %arg1, %c128_i32 : i32
      %c0_i32_8 = arith.constant 0 : i32
      %15 = arith.addi %14, %c0_i32_8 : i32
      %16 = vector.broadcast %15 : i32 to vector<2x32x128xi32>
      %17 = arith.addi %16, %13 : vector<2x32x128xi32>
      %c324_i32 = arith.constant 324 : i32
      %18 = vector.broadcast %c324_i32 : i32 to vector<2x32x128xi32>
      %19 = arith.cmpi slt, %17, %18 : vector<2x32x128xi32>
      %cst = arith.constant 0.000000e+00 : f32
      %20 = vector.broadcast %cst : f32 to vector<2x32x128xf32>
      %21 = arith.select %19, %12, %20 : vector<2x32x128xi1>, vector<2x32x128xf32>
      %cst_9 = arith.constant 0xFF800000 : f32
      %22 = vector.broadcast %cst_9 : f32 to vector<2x32x128xf32>
      %23 = arith.select %19, %12, %22 : vector<2x32x128xi1>, vector<2x32x128xf32>
      %c0_10 = arith.constant 0 : index
      %c0_11 = arith.constant 0 : index
      %c0_12 = arith.constant 0 : index
      %24 = vector.load %arg6[%c0_10, %c0_11, %c0_12] : memref<4x32x128xf32, #tpu.memory_space<vmem>>, vector<2x32x128xf32>
      %25 = arith.addf %24, %21 : vector<2x32x128xf32>
      %c0_13 = arith.constant 0 : index
      %c0_14 = arith.constant 0 : index
      %c0_15 = arith.constant 0 : index
      %26 = vector.load %arg6[%c0_13, %c0_14, %c0_15] : memref<4x32x128xf32, #tpu.memory_space<vmem>>, vector<2x32x128xf32>
      tpu.vector_store %arg6[%c0_13, %c0_14, %c0_15], %25 {strides = array<i32>} : memref<4x32x128xf32, #tpu.memory_space<vmem>>, vector<2x32x128xf32>,
      %c2 = arith.constant 2 : index
      %c0_16 = arith.constant 0 : index
      %c0_17 = arith.constant 0 : index
      %27 = vector.load %arg6[%c2, %c0_16, %c0_17] : memref<4x32x128xf32, #tpu.memory_space<vmem>>, vector<2x32x128xf32>
      %28 = arith.maximumf %27, %23 : vector<2x32x128xf32>
      %c2_18 = arith.constant 2 : index
      %c0_19 = arith.constant 0 : index
      %c0_20 = arith.constant 0 : index
      %29 = vector.load %arg6[%c2_18, %c0_19, %c0_20] : memref<4x32x128xf32, #tpu.memory_space<vmem>>, vector<2x32x128xf32>
      tpu.vector_store %arg6[%c2_18, %c0_19, %c0_20], %28 {strides = array<i32>} : memref<4x32x128xf32, #tpu.memory_space<vmem>>, vector<2x32x128xf32>,
    } else {
    }
    %c2_i32_4 = arith.constant 2 : i32
    %9 = arith.cmpi eq, %arg1, %c2_i32_4 : i32
    %10 = arith.extui %9 : i1 to i32
    %c0_i32_5 = arith.constant 0 : i32
    %11 = arith.cmpi ne, %10, %c0_i32_5 : i32
    scf.if %11 {
      %c0 = arith.constant 0 : index
      %c0_6 = arith.constant 0 : index
      %c0_7 = arith.constant 0 : index
      %12 = vector.load %arg6[%c0, %c0_6, %c0_7] : memref<4x32x128xf32, #tpu.memory_space<vmem>>, vector<4x32x128xf32>
      %cst = arith.constant dense<0.000000e+00> : vector<4x32xf32>
      %13 = vector.multi_reduction <add>, %12, %cst [2] : vector<4x32x128xf32> to vector<4x32xf32>
      %cst_8 = arith.constant dense<0xFF800000> : vector<4x32xf32>
      %14 = vector.multi_reduction <maximumf>, %12, %cst_8 [2] : vector<4x32x128xf32> to vector<4x32xf32>
      %15 = tpu.iota {dimensions = array<i32: 0>} : vector<4x32xi32>
      %c2_i32_9 = arith.constant 2 : i32
      %16 = vector.broadcast %c2_i32_9 : i32 to vector<4x32xi32>
      %17 = arith.cmpi slt, %15, %16 : vector<4x32xi32>
      %cst_10 = arith.constant 0.00308641978 : f32
      %18 = vector.broadcast %cst_10 : f32 to vector<4x32xf32>
      %19 = arith.mulf %13, %18 : vector<4x32xf32>
      %20 = arith.select %17, %19, %14 : vector<4x32xi1>, vector<4x32xf32>
      %c0_11 = arith.constant 0 : index
      %c0_12 = arith.constant 0 : index
      %21 = vector.load %arg3[%c0_11, %c0_12] : memref<32x2xf32, #tpu.memory_space<vmem>>, vector<32x2xf32>
      %c0_13 = arith.constant 0 : index
      %c0_14 = arith.constant 0 : index
      %22 = vector.load %arg4[%c0_13, %c0_14] : memref<2x32xf32, #tpu.memory_space<vmem>>, vector<2x32xf32>
      %cst_15 = arith.constant dense<0.000000e+00> : vector<4x2xf32>
      %23 = tpu.matmul %20, %21, %cst_15 {dimension_numbers = #tpu.dot_dimension_numbers<[1], [0], [0], [1], [0, 0, 1, 1], [], []>} : vector<4x32xf32>, vector<32x2xf32>, vector<4x2xf32> -> vector<4x2xf32>
      %cst_16 = arith.constant 0.000000e+00 : f32
      %24 = vector.broadcast %cst_16 : f32 to vector<4x2xf32>
      %25 = arith.maximumf %23, %24 : vector<4x2xf32>
      %cst_17 = arith.constant dense<0.000000e+00> : vector<4x32xf32>
      %26 = tpu.matmul %25, %22, %cst_17 {dimension_numbers = #tpu.dot_dimension_numbers<[1], [0], [0], [1], [0, 0, 1, 1], [], []>} : vector<4x2xf32>, vector<2x32xf32>, vector<4x32xf32> -> vector<4x32xf32>
      %27 = vector.extract_strided_slice %26 {offsets = [0, 0], sizes = [2, 32], strides = [1, 1]} : vector<4x32xf32> to vector<2x32xf32>
      %28 = vector.extract_strided_slice %26 {offsets = [2, 0], sizes = [2, 32], strides = [1, 1]} : vector<4x32xf32> to vector<2x32xf32>
      %29 = arith.addf %27, %28 : vector<2x32xf32>
      %30 = arith.negf %29 : vector<2x32xf32>
      %31 = math.exp %30 : vector<2x32xf32>
      %cst_18 = arith.constant 1.000000e+00 : f32
      %32 = vector.broadcast %cst_18 : f32 to vector<2x32xf32>
      %33 = arith.addf %32, %31 : vector<2x32xf32>
      %34 = arith.divf %32, %33 : vector<2x32xf32>
      %c0_19 = arith.constant 0 : index
      %c0_20 = arith.constant 0 : index
      %35 = vector.load %arg5[%c0_19, %c0_20] : memref<2x32xf32, #tpu.memory_space<vmem>>, vector<2x32xf32>
      tpu.vector_store %arg5[%c0_19, %c0_20], %34 {strides = array<i32>} : memref<2x32xf32, #tpu.memory_space<vmem>>, vector<2x32xf32>,
    } else {
    }
    return
  }
  func.func @transform_0(%arg0: i32, %arg1: i32) -> (i32, i32, i32) {
    %c0_i32 = arith.constant 0 : i32
    %c0_i32_0 = arith.constant 0 : i32
    return %arg0, %c0_i32, %arg1 : i32, i32, i32
  }
  func.func @transform_1(%arg0: i32, %arg1: i32) -> (i32, i32) {
    %c0_i32 = arith.constant 0 : i32
    %c0_i32_0 = arith.constant 0 : i32
    %c0_i32_1 = arith.constant 0 : i32
    return %c0_i32, %c0_i32_0 : i32, i32
  }
  func.func @transform_2(%arg0: i32, %arg1: i32) -> (i32, i32) {
    %c0_i32 = arith.constant 0 : i32
    %c0_i32_0 = arith.constant 0 : i32
    %c0_i32_1 = arith.constant 0 : i32
    return %c0_i32, %c0_i32_0 : i32, i32
  }
  func.func @transform_3(%arg0: i32, %arg1: i32) -> (i32, i32) {
    %c0_i32 = arith.constant 0 : i32
    %c0_i32_0 = arith.constant 0 : i32
    return %arg0, %c0_i32 : i32, i32
  }
}

</mosaic_0001>

<bundles_post_ra>
// kernel: tpu_custom_call.1
= control target key start
LH: loop header
LB: loop body
LE: loop exit
PB: predicated region body
PF: predicated region fallthrough
CT: control target
= control target key end

     0   :  { %8 = vsyncpa [#allocation4], 0  ;;  %s1498_s0 = inlined_call_operand.hbm [shape: f32[2,32,324], index: 0, kind: input, shape index: {}]   ;;  %s1499_s1 = inlined_call_operand.vmem [shape: f32[32,2], index: 1, kind: input, shape index: {}]   ;;  %s1500_s2 = inlined_call_operand.vmem [shape: f32[2,32], index: 2, kind: input, shape index: {}]   ;;  %s1501_s3 = inlined_call_operand.hbm [shape: f32[2,32], index: 3, kind: output, shape index: {}]  }
   0x1   :  { %10 = vsyncpa [#allocation4 + $0x1], 0 }
   0x2   :  { %11 = vsyncpa [#allocation5], 0  ;;  %s1171_s12 = smov 0   ;;  %s1173_s13 = smov 0  }
   0x3   :  { %s1175_s14 = smov 0   ;;  %s1177_s15 = smov 0  }
   0x4   :  { %s1179_s16 = smov 0   ;;  %s1181_s17 = smov 0  }
   0x5 LB: > { %s907_s18 = sadd.s32 4294967295, %s1139_s17   ;;  %s26_s19 = sadd.s32 1, %s1135_s16  ;;  %s1139_s17 = sphi %s1181_s17, %s17_s17   ;;  %s1135_s16 = sphi %s1179_s16, %s1511_s16   ;;  %s1131_s15 = sphi %s1177_s15, %s1510_s15   ;;  %s1127_s14 = sphi %s1175_s14, %s1509_s14   ;;  %s1123_s13 = sphi %s1173_s13, %s1508_s13   ;;  %s1119_s12 = sphi %s1171_s12, %s1507_s12  }
   0x6   : > { %p27_p0 = scmp.ge.s32.totalorder %s26_s19, 3  ;;  %s38_s20 = sadd.s32 1, %s1127_s14 }
   0x7   : > { %p45_p1 = scmp.ne.s32.totalorder %s1127_s14, %s1123_s13  ;;  %p46_p2 = scmp.eq.s32.totalorder %s1139_s17, 0 }
   0x8   : > { %s1513_s19 = smov (%p27_p0, %s26_s19), 0  ;;  %p51_p4 = scmp.ne.s32.totalorder %s1123_s13, %s1119_s12 }
   0x9   : > { %p1207_p3 = por %p46_p2, %p45_p1  ;;  %s34_s22 = ssub.s32 %s1135_s16, %s1513_s19 }
   0xa   : > { %p52_p5 = scmp.eq.s32.totalorder %s907_s18, 0  ;;  %p36_p6 = scmp.eq.s32.totalorder %s34_s22, 0 }
   0xb   : > { %p965_p8 = scmp.lt.s32.totalorder %s1139_s17, 3  ;;  %s149_s25 = sand.u32 1, %s1127_s14  }
   0xc   : > { %p1216_p7 = por %p52_p5, %p51_p4  ;;  %s911_s26 = sshll.u32 %s1135_s16, 7 }
   0xd   : > { %s1222_s24 = scalar_select %p36_p6, %s1127_s14, %s38_s20  }
   0xe   : > { %s910_s27 = sshll.u32 %s149_s25, 6  ;;  %s1229_s30 = scalar_lea.hbm %s1498_s0, %s911_s26 }
   0xf   : > { %s153_s4 = scalar_lea.vmem [#allocation3], %s910_s27  ;;  %p1233_p9 = pnand %p965_p8, %p1207_p3 }
  0x10   : > { %s162_s5 = sshll.u32 %s153_s4, 4  ;;  %s1240_s7 = scalar_lea.sflag [#allocation4], %s149_s25  ;;  %s1237_s5 = int_to_ptr.vmem [resolvable:$true] %s162_s5 }
  0x11   : > { %s1029_s8 = scalar_lea.hbm %s1229_s30, 1024  ;;  %p1031_p12 = pneg %p1233_p9 }
  0x12   : > { %p1030_p11 = scmp.ne.s32.totalorder %s1229_s30, %s1029_s8  ;;  %s1034_s11 = scalar_lea.hbm %s1498_s0, 3072 }
  0x13   : > { %p1035_p1 = scmp.lt.u32.totalorder %s1229_s30, %s1498_s0  ;;  %p1036_p2 = scmp.lt.u32.totalorder %s1034_s11, %s1029_s8 }
  0x14   : > { %p1032_p13 = pnand %p1031_p12, %p1030_p11  ;;  %p1038_p4 = scmp.lt.u32.totalorder %s1029_s8, %s1229_s30 }
  0x15   : > { %p1037_p3 = por %p1036_p2, %p1035_p1 }
  0x16   : > { %p1033_p0 = pneg %p1032_p13 }
  0x17   : > { %p1039_p5 = por %p1038_p4, %p1037_p3 }
  0x19   : > { %p1040_p6 = pnand %p1039_p5, %p1033_p0 }
  0x1b   : > { %1043 = shalt.err (!%p1040_p6)
}
  0x1c   : > { %s1044_s21 = scalar_lea.vmem %s1237_s5, 1024  ;;  %s1141_s22 = smov [#allocation3]  }
  0x1d   : > { %p1045_p8 = scmp.ne.s32.totalorder %s1237_s5, %s1044_s21  ;;  %s1049_s25 = sshll.u32 %s1141_s22, 4  ;;  %s1050_s25 = int_to_ptr.vmem [resolvable:$false] %s1049_s25 }
  0x1e   : > { %s1051_s26 = scalar_lea.vmem %s1050_s25, 2048  ;;  %p1052_p10 = scmp.lt.s32.totalorder %s1237_s5, %s1050_s25 }
  0x1f   : > { %p1047_p11 = pnand %p1045_p8, %p1031_p12  ;;  %p1053_p1 = scmp.lt.s32.totalorder %s1051_s26, %s1044_s21 }
  0x21   : > { %p1048_p13 = pneg %p1047_p11  ;;  %p1054_p2 = por %p1053_p1, %p1052_p10 }
  0x23   : > { %p1055_p3 = pnand %p1054_p2, %p1048_p13 }
  0x25   : > { %1058 = shalt.err (!%p1055_p3)
}
  0x26   : > { %s1142_s27 = smov 384   ;;  %s1143_s28 = smov 128  }
  0x27   : > { %s1144_s29 = smov 8   ;;  %p170_p12 = scmp.lt.s32.totalorder %s1139_s17, 4 }
  0x28   : > { %964 = dma.hbm_to_vmem [thread:$0]  (!%p1233_p9), %s1229_s30, 1024, %s1237_s5, %s1240_s7, %s1142_s27, %s1143_s28, %s1144_s29  }
  0x29   : > { %p1505_p0 = scmp.ge.s32.totalorder %s1139_s17, 1 }
  0x2b   : > { %p171_p4 = pnand %p1505_p0, %p170_p12 }
  0x2c   : > { %s176_s4 = sand.u32 (!%p171_p4), 1, %s1123_s13  }
  0x2d   : > { %174 = sbr.rel (%p171_p4) target bundleno = 778 (0x30a), region = 32  ;;  %s913_s8 = sshll.u32 (!%p171_p4), %s176_s4, 6 }
  0x2e   : > { %s177_s9 = scalar_lea.sflag (!%p171_p4), [#allocation4], %s176_s4  ;;  %s1272_s10 = scalar_lea.vmem (!%p171_p4), [#allocation3], %s913_s8 }
  0x34   : > { %1110 = dma.done.wait (%p1216_p7), %s177_s9, 1024  }
  0x35   : > { %1112 = vsyncadd (%p1216_p7), %s177_s9, 4294966272  ;;  %p914_p10 = scmp.ne.s32.totalorder %s1131_s15, 0 }
  0x36   : > { %v1145_v0 = vmov (!%p914_p10), 0.0   ;;  %v1146_v1 = vmov (!%p914_p10), -inf  }
  0x37   : > { %202 = sbr.rel (%p914_p10) target bundleno = 63 (0x3f), region = 40  ;;  %203 = vst [vmem:[#allocation2] sm:$0xff] (!%p914_p10), %v1145_v0  ;;  %204 = vst [vmem:[#allocation2 + $0x8] sm:$0xff] (!%p914_p10), %v1145_v0 }
  0x38   : > { %205 = vst [vmem:[#allocation2 + $0x10] sm:$0xff] (!%p914_p10), %v1145_v0  ;;  %206 = vst [vmem:[#allocation2 + $0x18] sm:$0xff] (!%p914_p10), %v1145_v0 }
  0x39   : > { %207 = vst [vmem:[#allocation2 + $0x20] sm:$0xff] (!%p914_p10), %v1145_v0  ;;  %208 = vst [vmem:[#allocation2 + $0x28] sm:$0xff] (!%p914_p10), %v1145_v0 }
  0x3a   : > { %209 = vst [vmem:[#allocation2 + $0x30] sm:$0xff] (!%p914_p10), %v1145_v0  ;;  %210 = vst [vmem:[#allocation2 + $0x38] sm:$0xff] (!%p914_p10), %v1145_v0 }
  0x3b   : > { %212 = vst [vmem:[#allocation2 + $0x40] sm:$0xff] (!%p914_p10), %v1146_v1  ;;  %213 = vst [vmem:[#allocation2 + $0x48] sm:$0xff] (!%p914_p10), %v1146_v1 }
  0x3c   : > { %214 = vst [vmem:[#allocation2 + $0x50] sm:$0xff] (!%p914_p10), %v1146_v1  ;;  %215 = vst [vmem:[#allocation2 + $0x58] sm:$0xff] (!%p914_p10), %v1146_v1 }
  0x3d   : > { %216 = vst [vmem:[#allocation2 + $0x60] sm:$0xff] (!%p914_p10), %v1146_v1  ;;  %217 = vst [vmem:[#allocation2 + $0x68] sm:$0xff] (!%p914_p10), %v1146_v1 }
  0x3e   : > { %218 = vst [vmem:[#allocation2 + $0x70] sm:$0xff] %v1146_v1  ;;  %219 = vst [vmem:[#allocation2 + $0x78] sm:$0xff] %v1146_v1 }
  0x3f PF: > { %p915_p7 = scmp.ge.s32.totalorder %s1131_s15, 2 }
  0x40   : > { %v224_v2 = vld [vmem:[%s1272_s10] sm:$0xff] (!%p915_p7)  ;;  %v225_v4 = vld [vmem:[%s1272_s10 + $0x8] sm:$0xff] (!%p915_p7)  ;;  %v226_v7 = vld [vmem:[%s1272_s10 + $0x10] sm:$0xff] (!%p915_p7) }
  0x41   : > { %223 = sbr.rel (%p915_p7) target bundleno = 77 (0x4d), region = 44  ;;  %v232_v3 = vld [vmem:[#allocation2] sm:$0xff] (!%p915_p7)  ;;  %v233_v6 = vld [vmem:[#allocation2 + $0x8] sm:$0xff] (!%p915_p7)  ;;  %v234_v8 = vld [vmem:[#allocation2 + $0x10] sm:$0xff] (!%p915_p7) }
  0x42   : > { %v240_v5 = vadd.f32 (!%p915_p7), %v232_v3, %v224_v2  ;;  %v241_v9 = vadd.f32 (!%p915_p7), %v233_v6, %v225_v4  ;;  %v242_v10 = vadd.f32 (!%p915_p7), %v234_v8, %v226_v7  ;;  %v227_v11 = vld [vmem:[%s1272_s10 + $0x18] sm:$0xff] (!%p915_p7)  ;;  %v228_v13 = vld [vmem:[%s1272_s10 + $0x20] sm:$0xff] (!%p915_p7)  ;;  %v229_v16 = vld [vmem:[%s1272_s10 + $0x28] sm:$0xff] (!%p915_p7) }
  0x43   : > { %v235_v12 = vld [vmem:[#allocation2 + $0x18] sm:$0xff] (!%p915_p7)  ;;  %v236_v15 = vld [vmem:[#allocation2 + $0x20] sm:$0xff] (!%p915_p7)  ;;  %v237_v17 = vld [vmem:[#allocation2 + $0x28] sm:$0xff] (!%p915_p7) }
  0x44   : > { %248 = vst [vmem:[#allocation2] sm:$0xff] (!%p915_p7), %v240_v5  ;;  %v243_v14 = vadd.f32 (!%p915_p7), %v235_v12, %v227_v11  ;;  %249 = vst [vmem:[#allocation2 + $0x8] sm:$0xff] (!%p915_p7), %v241_v9  ;;  %v244_v18 = vadd.f32 (!%p915_p7), %v236_v15, %v228_v13  ;;  %v245_v19 = vadd.f32 (!%p915_p7), %v237_v17, %v229_v16  ;;  %v230_v20 = vld [vmem:[%s1272_s10 + $0x30] sm:$0xff] (!%p915_p7)  ;;  %v231_v22 = vld [vmem:[%s1272_s10 + $0x38] sm:$0xff] (!%p915_p7) }
  0x45   : > { %250 = vst [vmem:[#allocation2 + $0x10] sm:$0xff] (!%p915_p7), %v242_v10  ;;  %v238_v21 = vld [vmem:[#allocation2 + $0x30] sm:$0xff] (!%p915_p7)  ;;  %v239_v24 = vld [vmem:[#allocation2 + $0x38] sm:$0xff] (!%p915_p7)  ;;  %v257_v25 = vld [vmem:[#allocation2 + $0x40] sm:$0xff] (!%p915_p7) }
  0x46   : > { %251 = vst [vmem:[#allocation2 + $0x18] sm:$0xff] (!%p915_p7), %v243_v14  ;;  %v246_v23 = vadd.f32 (!%p915_p7), %v238_v21, %v230_v20  ;;  %v258_v26 = vld [vmem:[#allocation2 + $0x48] sm:$0xff] (!%p915_p7)  ;;  %252 = vst [vmem:[#allocation2 + $0x20] sm:$0xff] (!%p915_p7), %v244_v18  ;;  %v247_v27 = vadd.f32 (!%p915_p7), %v239_v24, %v231_v22  ;;  %v265_v28 = vmax.f32 (!%p915_p7), %v257_v25, %v224_v2  ;;  %v259_v30 = vld [vmem:[#allocation2 + $0x50] sm:$0xff] (!%p915_p7) }
  0x47   : > { %253 = vst [vmem:[#allocation2 + $0x28] sm:$0xff] (!%p915_p7), %v245_v19  ;;  %v266_v29 = vmax.f32 (!%p915_p7), %v258_v26, %v225_v4  ;;  %v260_v31 = vld [vmem:[#allocation2 + $0x58] sm:$0xff] (!%p915_p7)  ;;  %v261_v32 = vld [vmem:[#allocation2 + $0x60] sm:$0xff] (!%p915_p7)  ;;  %v267_v33 = vmax.f32 (!%p915_p7), %v259_v30, %v226_v7  ;;  %v262_v36 = vld [vmem:[#allocation2 + $0x68] sm:$0xff] (!%p915_p7) }
  0x48   : > { %254 = vst [vmem:[#allocation2 + $0x30] sm:$0xff] %v246_v23  ;;  %v268_v34 = vmax.f32 %v260_v31, %v227_v11  ;;  %v269_v35 = vmax.f32 %v261_v32, %v228_v13  ;;  %v263_v37 = vld [vmem:[#allocation2 + $0x70] sm:$0xff]  ;;  %v264_v38 = vld [vmem:[#allocation2 + $0x78] sm:$0xff]  ;;  %255 = vst [vmem:[#allocation2 + $0x38] sm:$0xff] %v247_v27  ;;  %v270_v39 = vmax.f32 %v262_v36, %v229_v16 }
  0x49   : > { %273 = vst [vmem:[#allocation2 + $0x40] sm:$0xff] %v265_v28  ;;  %274 = vst [vmem:[#allocation2 + $0x48] sm:$0xff] %v266_v29  ;;  %v271_v40 = vmax.f32 %v263_v37, %v230_v20  ;;  %v272_v41 = vmax.f32 %v264_v38, %v231_v22 }
  0x4a   : > { %275 = vst [vmem:[#allocation2 + $0x50] sm:$0xff] %v267_v33  ;;  %276 = vst [vmem:[#allocation2 + $0x58] sm:$0xff] %v268_v34 }
  0x4b   : > { %277 = vst [vmem:[#allocation2 + $0x60] sm:$0xff] %v269_v35  ;;  %278 = vst [vmem:[#allocation2 + $0x68] sm:$0xff] %v270_v39 }
  0x4c   : > { %279 = vst [vmem:[#allocation2 + $0x70] sm:$0xff] %v271_v40  ;;  %280 = vst [vmem:[#allocation2 + $0x78] sm:$0xff] %v272_v41 }
  0x4d PF: > { %p916_p9 = scmp.ne.s32.totalorder %s1131_s15, 2 }
  0x4e   : > { %v293_v42 = vlaneseq (!%p916_p9)  ;;  %s917_s23 = sshll.u32 (!%p916_p9), %s1131_s15, 7  ;;  %v289_v46 = vld [vmem:[%s1272_s10 + $0x20] sm:$0xff] (!%p916_p9)  ;;  %v290_v51 = vld [vmem:[%s1272_s10 + $0x28] sm:$0xff] (!%p916_p9)  ;;  %v291_v56 = vld [vmem:[%s1272_s10 + $0x30] sm:$0xff] (!%p916_p9)  ;;  %vm1148_vm1 = vmmov (!%p916_p9), 0   ;;  %vm488_vm2 = vcmask (!%p916_p9), 130112  }
  0x4f   : > { %284 = sbr.rel (%p916_p9) target bundleno = 753 (0x2f1), region = 48  ;;  %v296_v43 = vstv (!%p916_p9), %s917_s23  ;;  %v285_v48 = vld [vmem:[%s1272_s10] sm:$0xff] (!%p916_p9)  ;;  %v286_v52 = vld [vmem:[%s1272_s10 + $0x8] sm:$0xff] (!%p916_p9)  ;;  %v287_v58 = vld [vmem:[%s1272_s10 + $0x10] sm:$0xff] (!%p916_p9)  ;;  %vm495_vm3 = vcmask (!%p916_p9), 195712   ;;  %vm502_vm4 = vcmask (!%p916_p9), 261312  }
  0x50   : > { %v1290_v44 = vand.u32 (!%p916_p9), 127, %v293_v42  ;;  %v1292_v45 = vshrl.u32 (!%p916_p9), %v293_v42, 7  ;;  %v315_v50 = vld [vmem:[#allocation2] sm:$0xff] (!%p916_p9)  ;;  %v316_v55 = vld [vmem:[#allocation2 + $0x8] sm:$0xff] (!%p916_p9)  ;;  %v292_v1 = vld [vmem:[%s1272_s10 + $0x38] sm:$0xff] (!%p916_p9)  ;;  %vm561_vm5 = vcmask (!%p916_p9), 1041409  }
  0x51   : > { %v317_v59 = vld [vmem:[#allocation2 + $0x10] sm:$0xff] (!%p916_p9)  ;;  %v341_v0 = vld [vmem:[#allocation2 + $0x48] sm:$0xff] (!%p916_p9)  ;;  %v340_v6 = vld [vmem:[#allocation2 + $0x40] sm:$0xff] (!%p916_p9)  ;;  %vm563_vm6 = vcmask (!%p916_p9), 1042434   ;;  %vm565_vm7 = vcmask (!%p916_p9), 1043459   ;;  %vm670_vm9 = vcmask (!%p916_p9), 261120  }
  0x52   : > { %v319_v47 = vld [vmem:[#allocation2 + $0x20] sm:$0xff] (!%p916_p9)  ;;  %v1297_v49 = vadd.s32 (!%p916_p9), %v296_v43, %v1290_v44  ;;  %v1303_v53 = vsub.s32 (!%p916_p9), %v1290_v44, %v1292_v45  ;;  %v288_v8 = vld [vmem:[%s1272_s10 + $0x18] sm:$0xff] (!%p916_p9)  ;;  %v342_v19 = vld [vmem:[#allocation2 + $0x50] sm:$0xff] (!%p916_p9)  ;;  %v483_v40 = vadd.s32 (!%p916_p9), 4294967288, %v1290_v44  ;;  %v490_v42 = vadd.s32 (!%p916_p9), 4294967280, %v1290_v44 }
  0x53   : > { %v320_v54 = vld [vmem:[#allocation2 + $0x28] sm:$0xff] (!%p916_p9)  ;;  %v318_v13 = vld [vmem:[#allocation2 + $0x18] sm:$0xff] (!%p916_p9)  ;;  %v344_v14 = vld [vmem:[#allocation2 + $0x60] sm:$0xff] (!%p916_p9)  ;;  %vm446_vm8 = vcmp.lt.s32.totalorder (!%p916_p9), %v1292_v45, 2  ;;  %vm749_vm10 = vcmask (!%p916_p9), 1041408   ;;  %vm745_vm11 = vcmask (!%p916_p9), 15360  }
  0x54   : > { %vm298_vm0 = vcmp.lt.s32.totalorder (!%p916_p9), %v1297_v49, 324  ;;  %v321_v57 = vld [vmem:[#allocation2 + $0x30] sm:$0xff] (!%p916_p9)  ;;  %v322_v7 = vld [vmem:[#allocation2 + $0x38] sm:$0xff] (!%p916_p9)  ;;  %v345_v20 = vld [vmem:[#allocation2 + $0x68] sm:$0xff] (!%p916_p9)  ;;  %v1360_v41 = vsub.s32 (!%p916_p9), %v483_v40, %v1292_v45  ;;  %v1364_v43 = vsub.s32 (!%p916_p9), %v490_v42, %v1292_v45  ;;  %vm833_vm12 = vcmask (!%p916_p9), 254976  }
  0x55   : > { %v303_v60 = vsel (!%p916_p9), %vm298_vm0, %v289_v46, 0.0  ;;  %v299_v61 = vsel (!%p916_p9), %vm298_vm0, %v285_v48, 0.0  ;;  %v304_v62 = vsel (!%p916_p9), %vm298_vm0, %v290_v51, 0.0  ;;  %v300_v63 = vsel (!%p916_p9), %vm298_vm0, %v286_v52, 0.0  ;;  %v343_v25 = vld [vmem:[#allocation2 + $0x58] sm:$0xff] (!%p916_p9)  ;;  %v346_v26 = vld [vmem:[#allocation2 + $0x70] sm:$0xff] (!%p916_p9) }
  0x56   : > { %v1317_v2 = vadd.f32 %v319_v47, %v303_v60  ;;  %v1319_v3 = vadd.f32 %v315_v50, %v299_v61  ;;  %v1321_v4 = vadd.f32 %v320_v54, %v304_v62  ;;  %v1323_v5 = vadd.f32 %v316_v55, %v300_v63  ;;  %v347_v31 = vld [vmem:[#allocation2 + $0x78] sm:$0xff] }
  0x57   : > { %v305_v9 = vsel %vm298_vm0, %v291_v56, 0.0  ;;  %v301_v10 = vsel %vm298_vm0, %v287_v58, 0.0  ;;  %v308_v11 = vsel %vm298_vm0, %v286_v52, -inf  ;;  %v307_v12 = vsel %vm298_vm0, %v285_v48, -inf  ;;  %v666_v48 = vld [vmem:[%s1499_s1 + $0x8] sm:$0xff]  ;;  %v668_v52 = vld [vmem:[%s1499_s1 + $0x18] sm:$0xff] }
  0x58   : > { %335 = vst [vmem:[#allocation2 + $0x20] sm:$0xff] %v1317_v2  ;;  %388 = vadd.xlane.f32.xlu1 %v1317_v2  ;;  %331 = vst [vmem:[#allocation2] sm:$0xff] %v1319_v3  ;;  %380 = vadd.xlane.f32.xlu0 %v1319_v3  ;;  %v329_v15 = vadd.f32 %v321_v57, %v305_v9  ;;  %v325_v16 = vadd.f32 %v317_v59, %v301_v10  ;;  %v306_v18 = vsel %vm298_vm0, %v292_v1, 0.0  ;;  %v1147_v50 = vmov 0.0|0.0  }
  0x59   : > { %336 = vst [vmem:[#allocation2 + $0x28] sm:$0xff] %v1321_v4  ;;  %332 = vst [vmem:[#allocation2 + $0x8] sm:$0xff] %v1323_v5  ;;  %v349_v17 = vmax.f32 %v341_v0, %v308_v11  ;;  %v348_v21 = vmax.f32 %v340_v6, %v307_v12  ;;  %v330_v22 = vadd.f32 %v322_v7, %v306_v18  ;;  %v302_v23 = vsel %vm298_vm0, %v288_v8, 0.0 }
  0x5a   : > { %v311_v24 = vsel %vm298_vm0, %v289_v46, -inf  ;;  %337 = vst [vmem:[#allocation2 + $0x30] sm:$0xff] %v329_v15  ;;  %333 = vst [vmem:[#allocation2 + $0x10] sm:$0xff] %v325_v16  ;;  %v326_v27 = vadd.f32 %v318_v13, %v302_v23  ;;  %v309_v29 = vsel %vm298_vm0, %v287_v58, -inf  ;;  %v312_v30 = vsel %vm298_vm0, %v290_v51, -inf  ;;  %949 = vmatprep.subr.bf16.mxu0 %v1147_v50  ;;  %v667_v51 = vld [vmem:[%s1499_s1 + $0x10] sm:$0xff] }
  0x5b   : > { %357 = vst [vmem:[#allocation2 + $0x48] sm:$0xff] %v349_v17  ;;  %v352_v28 = vmax.f32 %v344_v14, %v311_v24  ;;  %356 = vst [vmem:[#allocation2 + $0x40] sm:$0xff] %v348_v21  ;;  %v350_v32 = vmax.f32 %v342_v19, %v309_v29  ;;  %v353_v33 = vmax.f32 %v345_v20, %v312_v30  ;;  %v310_v34 = vsel %vm298_vm0, %v288_v8, -inf }
  0x5c   : > { %338 = vst [vmem:[#allocation2 + $0x38] sm:$0xff] %v330_v22  ;;  %v313_v35 = vsel %vm298_vm0, %v291_v56, -inf  ;;  %390 = vadd.xlane.f32.xlu1 %v1321_v4  ;;  %382 = vadd.xlane.f32.xlu0 %v1323_v5  ;;  %334 = vst [vmem:[#allocation2 + $0x18] sm:$0xff] %v326_v27  ;;  %v351_v36 = vmax.f32 %v343_v25, %v310_v34  ;;  %v314_v38 = vsel %vm298_vm0, %v292_v1, -inf  ;;  %v497_v46 = vadd.s32 4294967272, %v1290_v44  ;;  %v665_v44 = vld [vmem:[%s1499_s1] sm:$0xff] }
  0x5d   : > { %360 = vst [vmem:[#allocation2 + $0x60] sm:$0xff] %v352_v28  ;;  %v354_v37 = vmax.f32 %v346_v26, %v313_v35  ;;  %358 = vst [vmem:[#allocation2 + $0x50] sm:$0xff] %v350_v32  ;;  %v355_v39 = vmax.f32 %v347_v31, %v314_v38  ;;  %v950_v49 = vpack.c.bf16 %v666_v48, %v665_v44  ;;  %v1149_v55 = vmov 0.0  }
  0x5e   : > { %361 = vst [vmem:[#allocation2 + $0x68] sm:$0xff] %v353_v33  ;;  %359 = vst [vmem:[#allocation2 + $0x58] sm:$0xff] %v351_v36  ;;  %v1371_v47 = vsub.s32 %v497_v46, %v1292_v45  ;;  %v953_v54 = vpack.c.bf16 %v668_v52, %v667_v51  ;;  %941 = vmatprep.mubr.msk.f32.mxu0 %vm1148_vm1, %v1149_v55  ;;  %944 = vmatprep.subr.mxu1 %v1149_v55 }
  0x5f   : > { %362 = vst [vmem:[#allocation2 + $0x70] sm:$0xff] %v354_v37  ;;  %363 = vst [vmem:[#allocation2 + $0x78] sm:$0xff] %v355_v39  ;;  %951 = vmatpush3.bf16.msra.mxu0 %v950_v49  ;;  %946 = vmatprep.mubr.msk.f32.mxu1 %vm1148_vm1, %v1149_v55 }
  0x60   : > { %392 = vadd.xlane.f32.xlu1 %v329_v15  ;;  %384 = vadd.xlane.f32.xlu0 %v325_v16 }
  0x61   : > { %952 = vmatprep.subr.bf16.mxu0 %v1147_v50 }
  0x63   : > { %954 = vmatpush3.bf16.msra.mxu0 %v953_v54 }
  0x64   : > { %398 = vadd.xlane.f32.xlu1 %v349_v17  ;;  %396 = vadd.xlane.f32.xlu0 %v348_v21 }
  0x68   : > { %394 = vadd.xlane.f32.xlu1 %v330_v22  ;;  %386 = vadd.xlane.f32.xlu0 %v326_v27 }
  0x6c   : > { %404 = vadd.xlane.f32.xlu1 %v352_v28  ;;  %400 = vadd.xlane.f32.xlu0 %v350_v32 }
  0x70   : > { %412 = vmax.xlane.f32.xlu1 %v1319_v3  ;;  %406 = vadd.xlane.f32.xlu0 %v353_v33 }
  0x74   : > { %420 = vmax.xlane.f32.xlu1 %v1317_v2  ;;  %414 = vmax.xlane.f32.xlu0 %v1323_v5 }
  0x78   : > { %402 = vadd.xlane.f32.xlu1 %v351_v36  ;;  %422 = vmax.xlane.f32.xlu0 %v1321_v4 }
  0x7c   : > { %416 = vmax.xlane.f32.xlu1 %v325_v16  ;;  %408 = vadd.xlane.f32.xlu0 %v354_v37 }
  0x80   : > { %428 = vmax.xlane.f32.xlu1 %v348_v21  ;;  %424 = vmax.xlane.f32.xlu0 %v329_v15 }
  0x84   : > { %410 = vadd.xlane.f32.xlu1 %v355_v39  ;;  %430 = vmax.xlane.f32.xlu0 %v349_v17 }
  0x88   : > { %426 = vmax.xlane.f32.xlu1 %v330_v22  ;;  %418 = vmax.xlane.f32.xlu0 %v326_v27 }
  0x8c   : > { %436 = vmax.xlane.f32.xlu1 %v352_v28  ;;  %432 = vmax.xlane.f32.xlu0 %v350_v32 }
  0x90   : > { %434 = vmax.xlane.f32.xlu1 %v351_v36  ;;  %438 = vmax.xlane.f32.xlu0 %v353_v33 }
  0x94   : > { %440 = vmax.xlane.f32.xlu0 %v354_v37  ;;  %442 = vmax.xlane.f32.xlu1 %v355_v39 }
  0xe5   : > { %v389_v56 = vpop.xlane.xlu1 %388  ;;  %v381_v57 = vpop.xlane.xlu0 %380 }
  0xe6   : > { %v451_v58 = vmul.f32 0.0030864198, %v389_v56  ;;  %v447_v59 = vmul.f32 0.0030864198, %v381_v57 }
  0xe8   : > { %v507_v0 = vrot.slane %v451_v58, %v1303_v53  ;;  %v482_v1 = vrot.slane %v447_v59, %v1303_v53 }
  0xe9   : > { %v391_v60 = vpop.xlane.xlu1 %390  ;;  %v383_v61 = vpop.xlane.xlu0 %382 }
  0xea   : > { %v452_v62 = vmul.f32 0.0030864198, %v391_v60  ;;  %v448_v63 = vmul.f32 0.0030864198, %v383_v61 }
  0xec   : > { %v511_v2 = vrot.slane %v452_v62, %v1360_v41  ;;  %v487_v3 = vrot.slane %v448_v63, %v1360_v41 }
  0xed   : > { %v393_v4 = vpop.xlane.xlu1 %392  ;;  %v385_v5 = vpop.xlane.xlu0 %384 }
  0xee   : > { %v512_v6 = vsel %vm488_vm2, %v511_v2, %v507_v0  ;;  %v489_v7 = vsel %vm488_vm2, %v487_v3, %v482_v1  ;;  %v453_v8 = vmul.f32 0.0030864198, %v393_v4  ;;  %v449_v9 = vmul.f32 0.0030864198, %v385_v5 }
  0xf0   : > { %v516_v10 = vrot.slane %v453_v8, %v1364_v43  ;;  %v494_v11 = vrot.slane %v449_v9, %v1364_v43 }
  0xf1   : > { %v399_v12 = vpop.xlane.xlu1 %398  ;;  %v397_v13 = vpop.xlane.xlu0 %396 }
  0xf2   : > { %v517_v14 = vsel %vm495_vm3, %v516_v10, %v512_v6  ;;  %v496_v15 = vsel %vm495_vm3, %v494_v11, %v489_v7  ;;  %v456_v16 = vmul.f32 0.0030864198, %v399_v12  ;;  %v455_v17 = vmul.f32 0.0030864198, %v397_v13 }
  0xf4   : > { %v530_v18 = vrot.slane %v456_v16, %v1360_v41  ;;  %v526_v19 = vrot.slane %v455_v17, %v1303_v53 }
  0xf5   : > { %v395_v20 = vpop.xlane.xlu1 %394  ;;  %v387_v21 = vpop.xlane.xlu0 %386 }
  0xf6   : > { %v531_v22 = vsel %vm488_vm2, %v530_v18, %v526_v19  ;;  %v454_v23 = vmul.f32 0.0030864198, %v395_v20  ;;  %v450_v24 = vmul.f32 0.0030864198, %v387_v21 }
  0xf8   : > { %v521_v25 = vrot.slane %v454_v23, %v1371_v47  ;;  %v501_v26 = vrot.slane %v450_v24, %v1371_v47 }
  0xf9   : > { %v405_v27 = vpop.xlane.xlu1 %404  ;;  %v401_v28 = vpop.xlane.xlu0 %400 }
  0xfa   : > { %v522_v29 = vsel %vm502_vm4, %v521_v25, %v517_v14  ;;  %v503_v30 = vsel %vm502_vm4, %v501_v26, %v496_v15  ;;  %v457_v31 = vmul.f32 0.0030864198, %v401_v28  ;;  %v459_v33 = vmul.f32 0.0030864198, %v405_v27 }
  0xfb   : > { %v562_v32 = vsel %vm561_vm5, %v522_v29, %v503_v30 }
  0xfc   : > { %v535_v34 = vrot.slane %v457_v31, %v1364_v43  ;;  %v545_v39 = vrot.slane %v459_v33, %v1303_v53 }
  0xfd   : > { %v413_v35 = vpop.xlane.xlu1 %412  ;;  %v407_v36 = vpop.xlane.xlu0 %406 }
  0xfe   : > { %v536_v37 = vsel %vm495_vm3, %v535_v34, %v531_v22  ;;  %v460_v38 = vmul.f32 0.0030864198, %v407_v36  ;;  %v587_v44 = vrot.slane %v413_v35, %v1303_v53 }
 0x100   : > { %v549_v40 = vrot.slane %v460_v38, %v1360_v41 }
 0x101   : > { %v421_v42 = vpop.xlane.xlu1 %420  ;;  %v415_v46 = vpop.xlane.xlu0 %414 }
 0x102   : > { %v550_v48 = vsel %vm488_vm2, %v549_v40, %v545_v39  ;;  %v591_v49 = vrot.slane %v415_v46, %v1360_v41  ;;  %v606_v54 = vrot.slane %v421_v42, %v1303_v53  ;;  %v669_v46 = vld [vmem:[%s1500_s2] sm:$0x3] }
 0x103   : > { %945 = vmatpush3.msk.msra.mxu1 %vm749_vm10, %v669_v46 }
 0x104   : > { %v592_v50 = vsel %vm488_vm2, %v591_v49, %v587_v44 }
 0x105   : > { %v403_v51 = vpop.xlane.xlu1 %402  ;;  %v423_v52 = vpop.xlane.xlu0 %422 }
 0x106   : > { %v458_v55 = vmul.f32 0.0030864198, %v403_v51  ;;  %v610_v56 = vrot.slane %v423_v52, %v1360_v41 }
 0x108   : > { %v540_v57 = vrot.slane %v458_v55, %v1371_v47  ;;  %v611_v58 = vsel %vm488_vm2, %v610_v56, %v606_v54 }
 0x109   : > { %v417_v59 = vpop.xlane.xlu1 %416  ;;  %v409_v60 = vpop.xlane.xlu0 %408 }
 0x10a   : > { %v541_v61 = vsel %vm502_vm4, %v540_v57, %v536_v37  ;;  %v596_v62 = vrot.slane %v417_v59, %v1364_v43  ;;  %v461_v63 = vmul.f32 0.0030864198, %v409_v60 }
 0x10b   : > { %v564_v0 = vsel %vm563_vm6, %v541_v61, %v562_v32 }
 0x10c   : > { %v597_v1 = vsel %vm495_vm3, %v596_v62, %v592_v50  ;;  %v554_v2 = vrot.slane %v461_v63, %v1364_v43 }
 0x10d   : > { %v429_v3 = vpop.xlane.xlu1 %428  ;;  %v425_v4 = vpop.xlane.xlu0 %424 }
 0x10e   : > { %v555_v5 = vsel %vm495_vm3, %v554_v2, %v550_v48  ;;  %v615_v6 = vrot.slane %v425_v4, %v1364_v43  ;;  %v625_v10 = vrot.slane %v429_v3, %v1303_v53 }
 0x110   : > { %v616_v7 = vsel %vm495_vm3, %v615_v6, %v611_v58 }
 0x111   : > { %v411_v8 = vpop.xlane.xlu1 %410  ;;  %v431_v9 = vpop.xlane.xlu0 %430 }
 0x112   : > { %v462_v11 = vmul.f32 0.0030864198, %v411_v8  ;;  %v629_v12 = vrot.slane %v431_v9, %v1360_v41 }
 0x114   : > { %v559_v13 = vrot.slane %v462_v11, %v1371_v47  ;;  %v630_v14 = vsel %vm488_vm2, %v629_v12, %v625_v10 }
 0x115   : > { %v427_v15 = vpop.xlane.xlu1 %426  ;;  %v419_v16 = vpop.xlane.xlu0 %418 }
 0x116   : > { %v560_v17 = vsel %vm502_vm4, %v559_v13, %v555_v5  ;;  %v620_v18 = vrot.slane %v427_v15, %v1371_v47  ;;  %v601_v19 = vrot.slane %v419_v16, %v1371_v47 }
 0x117   : > { %v566_v20 = vsel %vm565_vm7, %v560_v17, %v564_v0 }
 0x118   : > { %v621_v21 = vsel %vm502_vm4, %v620_v18, %v616_v7  ;;  %v602_v22 = vsel %vm502_vm4, %v601_v19, %v597_v1 }
 0x119   : > { %v660_v23 = vsel %vm561_vm5, %v621_v21, %v602_v22  ;;  %v437_v24 = vpop.xlane.xlu1 %436  ;;  %v433_v25 = vpop.xlane.xlu0 %432 }
 0x11a   : > { %v634_v26 = vrot.slane %v433_v25, %v1364_v43  ;;  %v644_v30 = vrot.slane %v437_v24, %v1303_v53 }
 0x11c   : > { %v635_v27 = vsel %vm495_vm3, %v634_v26, %v630_v14 }
 0x11d   : > { %v435_v28 = vpop.xlane.xlu1 %434  ;;  %v439_v29 = vpop.xlane.xlu0 %438 }
 0x11e   : > { %v639_v31 = vrot.slane %v435_v28, %v1371_v47  ;;  %v648_v32 = vrot.slane %v439_v29, %v1360_v41 }
 0x120   : > { %v640_v33 = vsel %vm502_vm4, %v639_v31, %v635_v27  ;;  %v649_v34 = vsel %vm488_vm2, %v648_v32, %v644_v30 }
 0x121   : > { %v661_v35 = vsel %vm563_vm6, %v640_v33, %v660_v23  ;;  %v441_v36 = vpop.xlane.xlu0 %440  ;;  %v443_v37 = vpop.xlane.xlu1 %442 }
 0x122   : > { %v653_v38 = vrot.slane %v441_v36, %v1364_v43  ;;  %v658_v39 = vrot.slane %v443_v37, %v1371_v47 }
 0x124   : > { %v654_v40 = vsel %vm495_vm3, %v653_v38, %v649_v34 }
 0x125   : > { %v659_v53 = vsel %vm502_vm4, %v658_v39, %v654_v40 }
 0x126   : > { %v662_v41 = vsel %vm565_vm7, %v659_v53, %v661_v35 }
 0x127   : > { %v664_v42 = vsel %vm446_vm8, %v566_v20, %v662_v41 }
 0x128   : > { %942 = vmatmul.mubr.msk.f32.vlgmr.msra.gmra.mrb[0].mxu0 %vm670_vm9, %v664_v42 }
 0x1fb   : > { %v740_v43 = vpop.f32.mrb[0].mxu0 }
 0x1fc   : > { %v744_v47 = vmax.f32 %v740_v43, 0.0  ;;  %v943_v44 = vpop.f32.mrb[1].mxu0 }
 0x1fe   : > { %947 = vmatmul.mubr.msk.f32.vlgmr.msra.gmra.mrb[0].mxu1 %vm745_vm11, %v744_v47 }
 0x2d1   : > { %v819_v48 = vpop.f32.mrb[0].mxu1 }
 0x2d2   : > { %v824_v45 = vrot.slane %v819_v48, 2  ;;  %v948_v49 = vpop.f32.mrb[1].mxu1 }
 0x2d4   : > { %v826_v50 = vadd.f32 %v824_v45, %v819_v48 }
 0x2d6   : > { %v921_v51 = vmul.f32 -1.442695, %v826_v50 }
 0x2d8   : > { %1025 = vpow2.f32 %v921_v51 }
 0x2e2   : > { %v1026_v52 = vpop.eup %1025 }
 0x2e3   : > { %v830_v54 = vadd.f32 1.0, %v1026_v52 }
 0x2e5   : > { %1027 = vrcp.f32 %v830_v54 }
 0x2ef   : > { %v1028_v55 = vpop.eup %1027 }
 0x2f0   : > { %834 = vst.msk [vmem:[#allocation6] sm:$0x3] %vm833_vm12, %v1028_v55 }
 0x2f1 PF: > { %p1454_p5 = scmp.eq.s32.totalorder %s907_s18, 2  ;;  %s1150_s26 = smov [#allocation6]  }
 0x2f2   : > { %s844_s27 = sshll.u32 %s1150_s26, 4  ;;  %s845_s27 = int_to_ptr.vmem [resolvable:$true] %s844_s27 }
 0x2f3   : > { %s1059_s28 = scalar_lea.vmem %s845_s27, 32  ;;  %p1066_p13 = scmp.lt.s32.totalorder %s845_s27, %s845_s27 }
 0x2f4   : > { %p1060_p6 = scmp.ne.s32.totalorder %s845_s27, %s1059_s28  ;;  %p1067_p1 = scmp.lt.s32.totalorder %s1059_s28, %s1059_s28 }
 0x2f6   : > { %p1061_p8 = pnand %p1060_p6, %p1454_p5  ;;  %p1068_p2 = por %p1067_p1, %p1066_p13 }
 0x2f8   : > { %p1062_p11 = pneg %p1061_p8 }
 0x2fa   : > { %p1069_p3 = pnand %p1068_p2, %p1062_p11 }
 0x2fc   : > { %1072 = shalt.err (!%p1069_p3)
}
 0x2fd   : > { %s1073_s18 = scalar_lea.hbm %s1501_s3, 32 }
 0x2fe   : > { %p1074_p12 = scmp.ne.s32.totalorder %s1501_s3, %s1073_s18  ;;  %p1079_p10 = scmp.lt.u32.totalorder %s1073_s18, %s1501_s3 }
 0x300   : > { %p1075_p0 = pnand %p1074_p12, %p1454_p5 }
 0x302   : > { %p1076_p4 = pneg %p1075_p0 }
 0x304   : > { %p1081_p7 = pnand %p1079_p10, %p1076_p4 }
 0x306   : > { %1084 = shalt.err (!%p1081_p7)
}
 0x307   : > { %958 = dma.vmem_to_hbm [thread:$0]  (%p1454_p5), %s845_s27, 32, %s1501_s3, [#allocation5]  }
 0x308   : > { %1114 = dma.done.wait (%p1454_p5), [#allocation5], 32  }
 0x309   : > { %1116 = vsyncadd (%p1454_p5), [#allocation5], 4294967264 }
 0x30a PF: > { %s17_s17 = sadd.s32 1, %s1139_s17   ;;  %s1507_s12 = smov %s1123_s13 }
 0x30b   : > { %p14_p9 = scmp.ge.s32.totalorder %s17_s17, 5   ;;  %s1508_s13 = smov %s1127_s14 }
 0x30c   : > { %s1509_s14 = smov %s1222_s24  ;;  %s1510_s15 = smov %s1135_s16 }
 0x30d   : > { %s1511_s16 = smov %s1513_s19  ;;  %16 = sbr.rel (!%p14_p9) target bundleno = 5 (0x5), region = 85 }
 0x314   :  { %857 = vsyncpa [#allocation4], 1 }
 0x315   :  { %859 = vsyncpa [#allocation4 + $0x1], 1 }
 0x316   :  { %860 = vsyncpa [#allocation5], 1 }
 0x317   :  { %862 = vsyncpa [#allocation5 + $0x1], 1 }

</bundles_post_ra>
